<compile_context>
chip_gen: v6e
topology: v6e:2x2x1
jax: 0.10.0
libtpu: 0.0.40
codegen_flags: <defaults>
</compile_context>

<pallas_src>
import math
import functools

import jax
import jax.numpy as jnp
import numpy as np
from jax.experimental import pallas as pl
from jax.experimental.pallas import tpu as pltpu


# ----------------------------------------------------------------------------
# Pallas kernel: full encoder stack, one (row-block, layer) per grid step
# ----------------------------------------------------------------------------
def _layer_norm(x, gamma, beta, eps=1e-5):
    # One-pass mean/variance: E[x^2] - E[x]^2 (halves XLU reductions).
    n = x.shape[-1]
    inv_n = 1.0 / n
    s1 = jnp.sum(x, axis=-1, keepdims=True)
    s2 = jnp.sum(x * x, axis=-1, keepdims=True)
    mu = s1 * inv_n
    var = s2 * inv_n - mu * mu
    return (x - mu) * jax.lax.rsqrt(var + eps) * gamma + beta


def encoder_kernel(vl_ref,                               # (B,) int32 in SMEM
                   x_ref,                                # (rows, H) f32
                   wqkv_ref, wo_ref,                     # (H, 3H), (H, H) bf16
                   g1_ref, b1_ref,                       # (1, H) f32
                   w1_ref, bb1_ref,                      # (H, F) bf16, (1, F) f32
                   w2_ref, bb2_ref,                      # (F, H) bf16, (1, H) f32
                   g2_ref, b2_ref,                       # (1, H) f32
                   o_ref,                                # (rows, H) f32 (resident)
                   *, num_heads, block_batch, seq):
    r = pl.program_id(0)       # batch row-block (parallel)
    l = pl.program_id(1)       # layer (arbitrary / accumulator axis)

    # Layer 0: load this row-block's activations into the resident output block.
    @pl.when(l == 0)
    def _():
        o_ref[...] = x_ref[...]

    x = o_ref[...]                                       # (rows, H) f32
    rows, H = x.shape
    Bt, S = block_batch, seq
    NH = num_heads
    dh = H // NH
    scale = 1.0 / math.sqrt(dh)

    # --- fused QKV projection: one MXU pass with N = 3H ----------------------
    xb = x.astype(jnp.bfloat16)
    qkv = jnp.dot(xb, wqkv_ref[...], preferred_element_type=jnp.float32)  # (rows, 3H)

    # --- key-validity mask from SMEM scalars (no VMEM tile for 2 ints) -------
    bidx = jax.lax.broadcasted_iota(jnp.int32, (Bt, 1, S), 0)   # batch idx in block
    kpos = jax.lax.broadcasted_iota(jnp.int32, (Bt, 1, S), 2)   # key position
    vl_bc = jnp.zeros((Bt, 1, S), jnp.int32)
    for b in range(Bt):                                          # tiny static loop
        vl_bc = jnp.where(bidx == b, vl_ref[r * Bt + b], vl_bc)
    mask = kpos < vl_bc                                          # (Bt, 1, S)

    # --- multi-head attention: per-head scores/softmax/ctx, single W_o -------
    ctx_heads = []
    for h in range(NH):                                   # small static loop
        lo = h * dh
        qh = qkv[:, lo:lo + dh].reshape(Bt, S, dh).astype(jnp.bfloat16)
        kh = qkv[:, H + lo:H + lo + dh].reshape(Bt, S, dh).astype(jnp.bfloat16)
        vh = qkv[:, 2 * H + lo:2 * H + lo + dh].reshape(Bt, S, dh).astype(jnp.bfloat16)
        s = jnp.einsum('bqd,bkd->bqk', qh, kh,
                       preferred_element_type=jnp.float32) * scale
        s = jnp.where(mask, s, -1000000.0)                # masked_softmax semantics
        s = s - jnp.max(s, axis=-1, keepdims=True)
        e = jnp.exp(s)
        p = e * pl.reciprocal(jnp.sum(e, axis=-1, keepdims=True), approx=True)
        ctx = jnp.einsum('bqk,bkd->bqd', p.astype(jnp.bfloat16), vh,
                         preferred_element_type=jnp.float32)     # (Bt, S, dh)
        ctx_heads.append(ctx.reshape(rows, dh))

    # Concatenate heads on the lane axis -> ONE W_o matmul with K = H.
    ctx_all = jnp.concatenate(ctx_heads, axis=-1)                # (rows, H)
    attn_out = jnp.dot(ctx_all.astype(jnp.bfloat16), wo_ref[...],
                       preferred_element_type=jnp.float32)

    # TODO(synk): dropout layers are identity (eval mode).
    y = _layer_norm(attn_out + x, g1_ref[...], b1_ref[...])      # AddNorm1

    # --- FFN on the whole row-block slab -------------------------------------
    h1 = jnp.dot(y.astype(jnp.bfloat16), w1_ref[...],
                 preferred_element_type=jnp.float32) + bb1_ref[...]
    h1 = jnp.maximum(h1, 0.0)
    h2 = jnp.dot(h1.astype(jnp.bfloat16), w2_ref[...],
                 preferred_element_type=jnp.float32) + bb2_ref[...]

    out = _layer_norm(h2 + y, g2_ref[...], b2_ref[...])          # AddNorm2
    o_ref[...] = out.astype(o_ref.dtype)      # stays VMEM-resident across layers


def _pick_batch_blocks(B, S):
    """Split the batch into 2 row blocks (feeds v7x's 2 TCs) when it tiles cleanly."""
    if B % 2 == 0 and ((B // 2) * S) % 8 == 0:
        return 2
    return 1


def encoder_pallas(tokens, valid_lens, embedding, pos_table, stacked_params,
                   num_heads):
    """Full encoder forward: plain-JAX embedding/pos-enc + one fused Pallas call."""
    B, S = tokens.shape
    H = embedding.shape[1]

    # TODO(synk): embedding gather has no profitable Pallas equivalent at this size.
    x = embedding[tokens] * math.sqrt(H)
    x = x + pos_table[None, :S, :]
    x = x.reshape(B * S, H).astype(jnp.float32)

    vl = valid_lens.astype(jnp.int32)                 # (B,) scalar-prefetch -> SMEM

    (Wqkv, Wo, g1, b1, W1, bb1, W2, bb2, g2, b2) = stacked_params
    L = Wqkv.shape[0]
    F = W1.shape[2]

    R = _pick_batch_blocks(B, S)
    Bt = B // R
    rows = Bt * S                                      # rows per block (multiple of 8)

    def stacked(dims):      # per-layer block of a (L, *dims) stacked param
        return pl.BlockSpec((None,) + dims, lambda r, l, vl: (l,) + (0,) * len(dims))

    row_block = pl.BlockSpec((rows, H), lambda r, l, vl: (r, 0))

    out = pl.pallas_call(
        functools.partial(encoder_kernel, num_heads=num_heads,
                          block_batch=Bt, seq=S),
        out_shape=jax.ShapeDtypeStruct((B * S, H), jnp.float32),
        grid_spec=pltpu.PrefetchScalarGridSpec(
            num_scalar_prefetch=1,                     # valid_lens -> SMEM
            grid=(R, L),
            in_specs=[
                row_block,                             # input activations
                stacked((H, 3 * H)),                   # fused Wq|Wk|Wv
                stacked((H, H)),                       # Wo
                stacked((1, H)), stacked((1, H)),      # LN1 gamma/beta
                stacked((H, F)), stacked((1, F)),      # FFN dense1
                stacked((F, H)), stacked((1, H)),      # FFN dense2
                stacked((1, H)), stacked((1, H)),      # LN2 gamma/beta
            ],
            out_specs=row_block,                       # layer-resident accumulator
        ),
        compiler_params=pltpu.CompilerParams(
            dimension_semantics=("parallel", "arbitrary"),
            # Explicit budget: above the 32 MiB default scoped limit, below
            # v7x's 64 MiB physical VMEM.
            vmem_limit_bytes=48 * 1024 * 1024),
    )(vl, x, Wqkv, Wo, g1, b1, W1, bb1, W2, bb2, g2, b2)
    return out.reshape(B, S, H)


# ----------------------------------------------------------------------------
# Plain-JAX reference (same bf16-input / f32-accumulate matmul precision)
# ----------------------------------------------------------------------------
def positional_encoding_table(max_len, H):
    pos = jnp.arange(max_len, dtype=jnp.float32)[:, None]
    div = jnp.power(10000.0, jnp.arange(0, H, 2, dtype=jnp.float32) / H)
    X = pos / div
    P = jnp.zeros((max_len, H), dtype=jnp.float32)
    P = P.at[:, 0::2].set(jnp.sin(X))
    P = P.at[:, 1::2].set(jnp.cos(X))
    return P


def ref_block(x, valid_lens, params, num_heads, B, S):
    (Wq, Wk, Wv, Wo, g1, b1, W1, bb1, W2, bb2, g2, b2) = params
    BS, H = x.shape
    dh = H // num_heads
    bf = lambda a: a.astype(jnp.bfloat16)

    q = jnp.dot(bf(x), bf(Wq), preferred_element_type=jnp.float32)
    k = jnp.dot(bf(x), bf(Wk), preferred_element_type=jnp.float32)
    v = jnp.dot(bf(x), bf(Wv), preferred_element_type=jnp.float32)

    def heads(t):
        return t.reshape(B, S, num_heads, dh).transpose(0, 2, 1, 3)

    qh, kh, vh = heads(q), heads(k), heads(v)
    scores = jnp.einsum('bhqd,bhkd->bhqk', bf(qh), bf(kh),
                        preferred_element_type=jnp.float32) / math.sqrt(dh)
    key_mask = jnp.arange(S)[None, :] < valid_lens[:, None]         # (B, S)
    scores = jnp.where(key_mask[:, None, None, :], scores, -1000000.0)
    attn = jax.nn.softmax(scores, axis=-1)
    ctx = jnp.einsum('bhqk,bhkd->bhqd', bf(attn), bf(vh),
                     preferred_element_type=jnp.float32)
    ctx = ctx.transpose(0, 2, 1, 3).reshape(BS, H)
    attn_out = jnp.dot(bf(ctx), bf(Wo), preferred_element_type=jnp.float32)

    def ln(z, g, b):
        mu = z.mean(-1, keepdims=True)
        var = ((z - mu) ** 2).mean(-1, keepdims=True)
        return (z - mu) * jax.lax.rsqrt(var + 1e-5) * g + b

    y = ln(attn_out + x, g1, b1)
    h1 = jnp.maximum(jnp.dot(bf(y), bf(W1),
                             preferred_element_type=jnp.float32) + bb1, 0.0)
    h2 = jnp.dot(bf(h1), bf(W2), preferred_element_type=jnp.float32) + bb2
    return ln(h2 + y, g2, b2)


def ref_forward(tokens, valid_lens, embedding, pos_table, blocks, num_heads):
    B, S = tokens.shape
    H = embedding.shape[1]
    x = embedding[tokens] * math.sqrt(H)
    x = (x + pos_table[None, :S, :]).reshape(B * S, H)
    for params in blocks:
        x = ref_block(x, valid_lens, params, num_heads, B, S)
    return x.reshape(B, S, H)


# ----------------------------------------------------------------------------
def init_block_params(key, H, F):
    ks = jax.random.split(key, 8)
    s = 0.05
    Wq = jax.random.normal(ks[0], (H, H), jnp.float32) * s
    Wk = jax.random.normal(ks[1], (H, H), jnp.float32) * s
    Wv = jax.random.normal(ks[2], (H, H), jnp.float32) * s
    Wo = jax.random.normal(ks[3], (H, H), jnp.float32) * s
    g1 = jnp.ones((1, H), jnp.float32)
    b1 = jnp.zeros((1, H), jnp.float32)
    W1 = jax.random.normal(ks[4], (H, F), jnp.float32) * s
    bb1 = jax.random.normal(ks[5], (1, F), jnp.float32) * s
    W2 = jax.random.normal(ks[6], (F, H), jnp.float32) * s
    bb2 = jax.random.normal(ks[7], (1, H), jnp.float32) * s
    g2 = jnp.ones((1, H), jnp.float32)
    b2 = jnp.zeros((1, H), jnp.float32)
    return (Wq, Wk, Wv, Wo, g1, b1, W1, bb1, W2, bb2, g2, b2)


def stack_blocks(blocks):
    """Stack per-layer params along a leading L axis; fuse Wq|Wk|Wv; weights -> bf16."""
    Wq, Wk, Wv, Wo, g1, b1, W1, bb1, W2, bb2, g2, b2 = (
        jnp.stack(t) for t in zip(*blocks))
    Wqkv = jnp.concatenate([Wq, Wk, Wv], axis=-1)       # (L, H, 3H)
    bf = lambda w: w.astype(jnp.bfloat16)
    return (bf(Wqkv), bf(Wo), g1, b1, bf(W1), bb1, bf(W2), bb2, g2, b2)


if __name__ == "__main__":
    # Small config: vocab=50, B=2, S=8, H=32, heads=4, ffn_hidden=64, layers=2
    VOCAB, B, S, H, NH, F, L = 50, 2, 8, 32, 4, 64, 2

    root = jax.random.PRNGKey(0)
    k_emb, k_tok, *k_blocks = jax.random.split(root, 2 + L)

    embedding = jax.random.normal(k_emb, (VOCAB, H), jnp.float32)
    pos_table = positional_encoding_table(1000, H)
    blocks = [init_block_params(k_blocks[i], H, F) for i in range(L)]
    stacked_params = stack_blocks(blocks)

    tokens = jax.random.randint(k_tok, (B, S), 0, VOCAB, dtype=jnp.int32)
    valid_lens = jnp.array([8, 5], dtype=jnp.int32)

    out = encoder_pallas(tokens, valid_lens, embedding, pos_table,
                         stacked_params, NH)
    out = jax.block_until_ready(out)

    ref = ref_forward(tokens, valid_lens, embedding, pos_table, blocks, NH)
    np.testing.assert_allclose(np.asarray(out), np.asarray(ref),
                               rtol=1e-2, atol=1e-2)

    print("KERNEL_OK")
</pallas_src>

<mosaic_0001>
module attributes {stable_mosaic.version = 11 : i64} {
  func.func @encoder_kernel(%arg0: i32, %arg1: i32, %arg2: memref<2xi32, #tpu.memory_space<smem>>, %arg3: memref<8x32xf32, #tpu.memory_space<vmem>>, %arg4: memref<1x32x96xbf16, #tpu.memory_space<vmem>>, %arg5: memref<1x32x32xbf16, #tpu.memory_space<vmem>>, %arg6: memref<1x1x32xf32, #tpu.memory_space<vmem>>, %arg7: memref<1x1x32xf32, #tpu.memory_space<vmem>>, %arg8: memref<1x32x64xbf16, #tpu.memory_space<vmem>>, %arg9: memref<1x1x64xf32, #tpu.memory_space<vmem>>, %arg10: memref<1x64x32xbf16, #tpu.memory_space<vmem>>, %arg11: memref<1x1x32xf32, #tpu.memory_space<vmem>>, %arg12: memref<1x1x32xf32, #tpu.memory_space<vmem>>, %arg13: memref<1x1x32xf32, #tpu.memory_space<vmem>>, %arg14: memref<8x32xf32, #tpu.memory_space<vmem>>) attributes {dimension_semantics = [#tpu.dimension_semantics<parallel>, #tpu.dimension_semantics<arbitrary>], iteration_bounds = array<i64: 2, 2>, scalar_prefetch = 1 : i64, scratch_operands = 0 : i64, tpu.core_type = #tpu.core_type<tc>, window_params = [{transform_indices = @transform_0, window_bounds = array<i64: 8, 32>}, {transform_indices = @transform_1, window_bounds = array<i64: 1, 32, 96>}, {transform_indices = @transform_2, window_bounds = array<i64: 1, 32, 32>}, {transform_indices = @transform_3, window_bounds = array<i64: 1, 1, 32>}, {transform_indices = @transform_4, window_bounds = array<i64: 1, 1, 32>}, {transform_indices = @transform_5, window_bounds = array<i64: 1, 32, 64>}, {transform_indices = @transform_6, window_bounds = array<i64: 1, 1, 64>}, {transform_indices = @transform_7, window_bounds = array<i64: 1, 64, 32>}, {transform_indices = @transform_8, window_bounds = array<i64: 1, 1, 32>}, {transform_indices = @transform_9, window_bounds = array<i64: 1, 1, 32>}, {transform_indices = @transform_10, window_bounds = array<i64: 1, 1, 32>}, {transform_indices = @transform_11, window_bounds = array<i64: 8, 32>}]} {
    %c0_i32 = arith.constant 0 : i32
    %0 = arith.cmpi eq, %arg1, %c0_i32 : i32
    %1 = arith.extui %0 : i1 to i32
    %c0_i32_0 = arith.constant 0 : i32
    %2 = arith.cmpi ne, %1, %c0_i32_0 : i32
    scf.if %2 {
      %c0_75 = arith.constant 0 : index
      %c0_76 = arith.constant 0 : index
      %214 = vector.load %arg3[%c0_75, %c0_76] : memref<8x32xf32, #tpu.memory_space<vmem>>, vector<8x32xf32>
      %c0_77 = arith.constant 0 : index
      %c0_78 = arith.constant 0 : index
      %215 = vector.load %arg14[%c0_77, %c0_78] : memref<8x32xf32, #tpu.memory_space<vmem>>, vector<8x32xf32>
      tpu.vector_store %arg14[%c0_77, %c0_78], %214 {strides = array<i32>} : memref<8x32xf32, #tpu.memory_space<vmem>>, vector<8x32xf32>,
    } else {
    }
    %c0 = arith.constant 0 : index
    %c0_1 = arith.constant 0 : index
    %3 = vector.load %arg14[%c0, %c0_1] : memref<8x32xf32, #tpu.memory_space<vmem>>, vector<8x32xf32>
    %4 = arith.truncf %3 : vector<8x32xf32> to vector<8x32xbf16>
    %c0_2 = arith.constant 0 : index
    %c0_3 = arith.constant 0 : index
    %c0_4 = arith.constant 0 : index
    %5 = vector.load %arg4[%c0_2, %c0_3, %c0_4] : memref<1x32x96xbf16, #tpu.memory_space<vmem>>, vector<1x32x96xbf16>
    %6 = vector.shape_cast %5 : vector<1x32x96xbf16> to vector<32x96xbf16>
    %cst = arith.constant dense<0.000000e+00> : vector<8x96xf32>
    %7 = tpu.matmul %4, %6, %cst {dimension_numbers = #tpu.dot_dimension_numbers<[1], [0], [0], [1], [0, 0, 1, 1], [], []>} : vector<8x32xbf16>, vector<32x96xbf16>, vector<8x96xf32> -> vector<8x96xf32>
    %8 = tpu.iota {dimensions = array<i32: 0>} : vector<1x1x8xi32>
    %9 = tpu.iota {dimensions = array<i32: 2>} : vector<1x1x8xi32>
    %c0_i32_5 = arith.constant 0 : i32
    %10 = vector.broadcast %c0_i32_5 : i32 to vector<1x1x8xi32>
    %c0_i32_6 = arith.constant 0 : i32
    %11 = vector.broadcast %c0_i32_6 : i32 to vector<1x1x8xi32>
    %12 = arith.cmpi eq, %8, %11 : vector<1x1x8xi32>
    %c1_i32 = arith.constant 1 : i32
    %13 = arith.muli %arg0, %c1_i32 : i32
    %c0_i32_7 = arith.constant 0 : i32
    %14 = arith.addi %13, %c0_i32_7 : i32
    %15 = arith.index_cast %14 : i32 to index
    %16 = memref.load %arg2[%15] : memref<2xi32, #tpu.memory_space<smem>>
    %17 = vector.broadcast %16 : i32 to vector<1x1x8xi32>
    %18 = arith.select %12, %17, %10 : vector<1x1x8xi1>, vector<1x1x8xi32>
    %19 = arith.cmpi slt, %9, %18 : vector<1x1x8xi32>
    %20 = vector.extract_strided_slice %7 {offsets = [0, 0], sizes = [8, 8], strides = [1, 1]} : vector<8x96xf32> to vector<8x8xf32>
    %21 = vector.shape_cast %20 : vector<8x8xf32> to vector<1x8x8xf32>
    %22 = arith.truncf %21 : vector<1x8x8xf32> to vector<1x8x8xbf16>
    %23 = vector.extract_strided_slice %7 {offsets = [0, 32], sizes = [8, 8], strides = [1, 1]} : vector<8x96xf32> to vector<8x8xf32>
    %24 = vector.shape_cast %23 : vector<8x8xf32> to vector<1x8x8xf32>
    %25 = arith.truncf %24 : vector<1x8x8xf32> to vector<1x8x8xbf16>
    %26 = vector.extract_strided_slice %7 {offsets = [0, 64], sizes = [8, 8], strides = [1, 1]} : vector<8x96xf32> to vector<8x8xf32>
    %27 = vector.shape_cast %26 : vector<8x8xf32> to vector<1x8x8xf32>
    %28 = arith.truncf %27 : vector<1x8x8xf32> to vector<1x8x8xbf16>
    "tpu.trace_start"() <{level = 10 : i32, message = "bqd,bkd->bqk"}> : () -> ()
    %cst_8 = arith.constant dense<0.000000e+00> : vector<1x8x8xf32>
    %29 = tpu.matmul %22, %25, %cst_8 {dimension_numbers = #tpu.dot_dimension_numbers<[2], [2], [1], [1], [0, 0, 0, 1, 1, 1], [0], [0]>} : vector<1x8x8xbf16>, vector<1x8x8xbf16>, vector<1x8x8xf32> -> vector<1x8x8xf32>
    "tpu.trace_stop"() : () -> ()
    %cst_9 = arith.constant 0.353553385 : f32
    %30 = vector.broadcast %cst_9 : f32 to vector<1x8x8xf32>
    %31 = arith.mulf %29, %30 : vector<1x8x8xf32>
    %cst_10 = arith.constant -1.000000e+06 : f32
    %32 = vector.shape_cast %19 : vector<1x1x8xi1> to vector<1x1x8xi1>
    %33 = vector.broadcast %32 : vector<1x1x8xi1> to vector<1x8x8xi1>
    %34 = vector.broadcast %cst_10 : f32 to vector<1x8x8xf32>
    %35 = arith.select %33, %31, %34 : vector<1x8x8xi1>, vector<1x8x8xf32>
    %cst_11 = arith.constant dense<0xFF800000> : vector<1x8xf32>
    %36 = vector.multi_reduction <maximumf>, %35, %cst_11 [2] : vector<1x8x8xf32> to vector<1x8xf32>
    %37 = vector.shape_cast %36 : vector<1x8xf32> to vector<1x8x1xf32>
    %38 = vector.broadcast %37 : vector<1x8x1xf32> to vector<1x8x8xf32>
    %39 = arith.subf %35, %38 : vector<1x8x8xf32>
    %40 = math.exp %39 : vector<1x8x8xf32>
    %cst_12 = arith.constant dense<0.000000e+00> : vector<1x8xf32>
    %41 = vector.multi_reduction <add>, %40, %cst_12 [2] : vector<1x8x8xf32> to vector<1x8xf32>
    %42 = vector.shape_cast %41 : vector<1x8xf32> to vector<1x8x1xf32>
    %43 = tpu.reciprocal %42 {approx = true} : vector<1x8x1xf32> -> vector<1x8x1xf32>
    %44 = vector.broadcast %43 : vector<1x8x1xf32> to vector<1x8x8xf32>
    %45 = arith.mulf %40, %44 : vector<1x8x8xf32>
    %46 = arith.truncf %45 : vector<1x8x8xf32> to vector<1x8x8xbf16>
    "tpu.trace_start"() <{level = 10 : i32, message = "bqk,bkd->bqd"}> : () -> ()
    %cst_13 = arith.constant dense<0.000000e+00> : vector<1x8x8xf32>
    %47 = tpu.matmul %46, %28, %cst_13 {dimension_numbers = #tpu.dot_dimension_numbers<[2], [1], [1], [2], [0, 0, 0, 1, 1, 2], [0], [0]>} : vector<1x8x8xbf16>, vector<1x8x8xbf16>, vector<1x8x8xf32> -> vector<1x8x8xf32>
    "tpu.trace_stop"() : () -> ()
    %48 = vector.shape_cast %47 : vector<1x8x8xf32> to vector<8x8xf32>
    %49 = vector.extract_strided_slice %7 {offsets = [0, 8], sizes = [8, 8], strides = [1, 1]} : vector<8x96xf32> to vector<8x8xf32>
    %50 = vector.shape_cast %49 : vector<8x8xf32> to vector<1x8x8xf32>
    %51 = arith.truncf %50 : vector<1x8x8xf32> to vector<1x8x8xbf16>
    %52 = vector.extract_strided_slice %7 {offsets = [0, 40], sizes = [8, 8], strides = [1, 1]} : vector<8x96xf32> to vector<8x8xf32>
    %53 = vector.shape_cast %52 : vector<8x8xf32> to vector<1x8x8xf32>
    %54 = arith.truncf %53 : vector<1x8x8xf32> to vector<1x8x8xbf16>
    %55 = vector.extract_strided_slice %7 {offsets = [0, 72], sizes = [8, 8], strides = [1, 1]} : vector<8x96xf32> to vector<8x8xf32>
    %56 = vector.shape_cast %55 : vector<8x8xf32> to vector<1x8x8xf32>
    %57 = arith.truncf %56 : vector<1x8x8xf32> to vector<1x8x8xbf16>
    "tpu.trace_start"() <{level = 10 : i32, message = "bqd,bkd->bqk"}> : () -> ()
    %cst_14 = arith.constant dense<0.000000e+00> : vector<1x8x8xf32>
    %58 = tpu.matmul %51, %54, %cst_14 {dimension_numbers = #tpu.dot_dimension_numbers<[2], [2], [1], [1], [0, 0, 0, 1, 1, 1], [0], [0]>} : vector<1x8x8xbf16>, vector<1x8x8xbf16>, vector<1x8x8xf32> -> vector<1x8x8xf32>
    "tpu.trace_stop"() : () -> ()
    %cst_15 = arith.constant 0.353553385 : f32
    %59 = vector.broadcast %cst_15 : f32 to vector<1x8x8xf32>
    %60 = arith.mulf %58, %59 : vector<1x8x8xf32>
    %cst_16 = arith.constant -1.000000e+06 : f32
    %61 = vector.shape_cast %19 : vector<1x1x8xi1> to vector<1x1x8xi1>
    %62 = vector.broadcast %61 : vector<1x1x8xi1> to vector<1x8x8xi1>
    %63 = vector.broadcast %cst_16 : f32 to vector<1x8x8xf32>
    %64 = arith.select %62, %60, %63 : vector<1x8x8xi1>, vector<1x8x8xf32>
    %cst_17 = arith.constant dense<0xFF800000> : vector<1x8xf32>
    %65 = vector.multi_reduction <maximumf>, %64, %cst_17 [2] : vector<1x8x8xf32> to vector<1x8xf32>
    %66 = vector.shape_cast %65 : vector<1x8xf32> to vector<1x8x1xf32>
    %67 = vector.broadcast %66 : vector<1x8x1xf32> to vector<1x8x8xf32>
    %68 = arith.subf %64, %67 : vector<1x8x8xf32>
    %69 = math.exp %68 : vector<1x8x8xf32>
    %cst_18 = arith.constant dense<0.000000e+00> : vector<1x8xf32>
    %70 = vector.multi_reduction <add>, %69, %cst_18 [2] : vector<1x8x8xf32> to vector<1x8xf32>
    %71 = vector.shape_cast %70 : vector<1x8xf32> to vector<1x8x1xf32>
    %72 = tpu.reciprocal %71 {approx = true} : vector<1x8x1xf32> -> vector<1x8x1xf32>
    %73 = vector.broadcast %72 : vector<1x8x1xf32> to vector<1x8x8xf32>
    %74 = arith.mulf %69, %73 : vector<1x8x8xf32>
    %75 = arith.truncf %74 : vector<1x8x8xf32> to vector<1x8x8xbf16>
    "tpu.trace_start"() <{level = 10 : i32, message = "bqk,bkd->bqd"}> : () -> ()
    %cst_19 = arith.constant dense<0.000000e+00> : vector<1x8x8xf32>
    %76 = tpu.matmul %75, %57, %cst_19 {dimension_numbers = #tpu.dot_dimension_numbers<[2], [1], [1], [2], [0, 0, 0, 1, 1, 2], [0], [0]>} : vector<1x8x8xbf16>, vector<1x8x8xbf16>, vector<1x8x8xf32> -> vector<1x8x8xf32>
    "tpu.trace_stop"() : () -> ()
    %77 = vector.shape_cast %76 : vector<1x8x8xf32> to vector<8x8xf32>
    %78 = vector.extract_strided_slice %7 {offsets = [0, 16], sizes = [8, 8], strides = [1, 1]} : vector<8x96xf32> to vector<8x8xf32>
    %79 = vector.shape_cast %78 : vector<8x8xf32> to vector<1x8x8xf32>
    %80 = arith.truncf %79 : vector<1x8x8xf32> to vector<1x8x8xbf16>
    %81 = vector.extract_strided_slice %7 {offsets = [0, 48], sizes = [8, 8], strides = [1, 1]} : vector<8x96xf32> to vector<8x8xf32>
    %82 = vector.shape_cast %81 : vector<8x8xf32> to vector<1x8x8xf32>
    %83 = arith.truncf %82 : vector<1x8x8xf32> to vector<1x8x8xbf16>
    %84 = vector.extract_strided_slice %7 {offsets = [0, 80], sizes = [8, 8], strides = [1, 1]} : vector<8x96xf32> to vector<8x8xf32>
    %85 = vector.shape_cast %84 : vector<8x8xf32> to vector<1x8x8xf32>
    %86 = arith.truncf %85 : vector<1x8x8xf32> to vector<1x8x8xbf16>
    "tpu.trace_start"() <{level = 10 : i32, message = "bqd,bkd->bqk"}> : () -> ()
    %cst_20 = arith.constant dense<0.000000e+00> : vector<1x8x8xf32>
    %87 = tpu.matmul %80, %83, %cst_20 {dimension_numbers = #tpu.dot_dimension_numbers<[2], [2], [1], [1], [0, 0, 0, 1, 1, 1], [0], [0]>} : vector<1x8x8xbf16>, vector<1x8x8xbf16>, vector<1x8x8xf32> -> vector<1x8x8xf32>
    "tpu.trace_stop"() : () -> ()
    %cst_21 = arith.constant 0.353553385 : f32
    %88 = vector.broadcast %cst_21 : f32 to vector<1x8x8xf32>
    %89 = arith.mulf %87, %88 : vector<1x8x8xf32>
    %cst_22 = arith.constant -1.000000e+06 : f32
    %90 = vector.shape_cast %19 : vector<1x1x8xi1> to vector<1x1x8xi1>
    %91 = vector.broadcast %90 : vector<1x1x8xi1> to vector<1x8x8xi1>
    %92 = vector.broadcast %cst_22 : f32 to vector<1x8x8xf32>
    %93 = arith.select %91, %89, %92 : vector<1x8x8xi1>, vector<1x8x8xf32>
    %cst_23 = arith.constant dense<0xFF800000> : vector<1x8xf32>
    %94 = vector.multi_reduction <maximumf>, %93, %cst_23 [2] : vector<1x8x8xf32> to vector<1x8xf32>
    %95 = vector.shape_cast %94 : vector<1x8xf32> to vector<1x8x1xf32>
    %96 = vector.broadcast %95 : vector<1x8x1xf32> to vector<1x8x8xf32>
    %97 = arith.subf %93, %96 : vector<1x8x8xf32>
    %98 = math.exp %97 : vector<1x8x8xf32>
    %cst_24 = arith.constant dense<0.000000e+00> : vector<1x8xf32>
    %99 = vector.multi_reduction <add>, %98, %cst_24 [2] : vector<1x8x8xf32> to vector<1x8xf32>
    %100 = vector.shape_cast %99 : vector<1x8xf32> to vector<1x8x1xf32>
    %101 = tpu.reciprocal %100 {approx = true} : vector<1x8x1xf32> -> vector<1x8x1xf32>
    %102 = vector.broadcast %101 : vector<1x8x1xf32> to vector<1x8x8xf32>
    %103 = arith.mulf %98, %102 : vector<1x8x8xf32>
    %104 = arith.truncf %103 : vector<1x8x8xf32> to vector<1x8x8xbf16>
    "tpu.trace_start"() <{level = 10 : i32, message = "bqk,bkd->bqd"}> : () -> ()
    %cst_25 = arith.constant dense<0.000000e+00> : vector<1x8x8xf32>
    %105 = tpu.matmul %104, %86, %cst_25 {dimension_numbers = #tpu.dot_dimension_numbers<[2], [1], [1], [2], [0, 0, 0, 1, 1, 2], [0], [0]>} : vector<1x8x8xbf16>, vector<1x8x8xbf16>, vector<1x8x8xf32> -> vector<1x8x8xf32>
    "tpu.trace_stop"() : () -> ()
    %106 = vector.shape_cast %105 : vector<1x8x8xf32> to vector<8x8xf32>
    %107 = vector.extract_strided_slice %7 {offsets = [0, 24], sizes = [8, 8], strides = [1, 1]} : vector<8x96xf32> to vector<8x8xf32>
    %108 = vector.shape_cast %107 : vector<8x8xf32> to vector<1x8x8xf32>
    %109 = arith.truncf %108 : vector<1x8x8xf32> to vector<1x8x8xbf16>
    %110 = vector.extract_strided_slice %7 {offsets = [0, 56], sizes = [8, 8], strides = [1, 1]} : vector<8x96xf32> to vector<8x8xf32>
    %111 = vector.shape_cast %110 : vector<8x8xf32> to vector<1x8x8xf32>
    %112 = arith.truncf %111 : vector<1x8x8xf32> to vector<1x8x8xbf16>
    %113 = vector.extract_strided_slice %7 {offsets = [0, 88], sizes = [8, 8], strides = [1, 1]} : vector<8x96xf32> to vector<8x8xf32>
    %114 = vector.shape_cast %113 : vector<8x8xf32> to vector<1x8x8xf32>
    %115 = arith.truncf %114 : vector<1x8x8xf32> to vector<1x8x8xbf16>
    "tpu.trace_start"() <{level = 10 : i32, message = "bqd,bkd->bqk"}> : () -> ()
    %cst_26 = arith.constant dense<0.000000e+00> : vector<1x8x8xf32>
    %116 = tpu.matmul %109, %112, %cst_26 {dimension_numbers = #tpu.dot_dimension_numbers<[2], [2], [1], [1], [0, 0, 0, 1, 1, 1], [0], [0]>} : vector<1x8x8xbf16>, vector<1x8x8xbf16>, vector<1x8x8xf32> -> vector<1x8x8xf32>
    "tpu.trace_stop"() : () -> ()
    %cst_27 = arith.constant 0.353553385 : f32
    %117 = vector.broadcast %cst_27 : f32 to vector<1x8x8xf32>
    %118 = arith.mulf %116, %117 : vector<1x8x8xf32>
    %cst_28 = arith.constant -1.000000e+06 : f32
    %119 = vector.shape_cast %19 : vector<1x1x8xi1> to vector<1x1x8xi1>
    %120 = vector.broadcast %119 : vector<1x1x8xi1> to vector<1x8x8xi1>
    %121 = vector.broadcast %cst_28 : f32 to vector<1x8x8xf32>
    %122 = arith.select %120, %118, %121 : vector<1x8x8xi1>, vector<1x8x8xf32>
    %cst_29 = arith.constant dense<0xFF800000> : vector<1x8xf32>
    %123 = vector.multi_reduction <maximumf>, %122, %cst_29 [2] : vector<1x8x8xf32> to vector<1x8xf32>
    %124 = vector.shape_cast %123 : vector<1x8xf32> to vector<1x8x1xf32>
    %125 = vector.broadcast %124 : vector<1x8x1xf32> to vector<1x8x8xf32>
    %126 = arith.subf %122, %125 : vector<1x8x8xf32>
    %127 = math.exp %126 : vector<1x8x8xf32>
    %cst_30 = arith.constant dense<0.000000e+00> : vector<1x8xf32>
    %128 = vector.multi_reduction <add>, %127, %cst_30 [2] : vector<1x8x8xf32> to vector<1x8xf32>
    %129 = vector.shape_cast %128 : vector<1x8xf32> to vector<1x8x1xf32>
    %130 = tpu.reciprocal %129 {approx = true} : vector<1x8x1xf32> -> vector<1x8x1xf32>
    %131 = vector.broadcast %130 : vector<1x8x1xf32> to vector<1x8x8xf32>
    %132 = arith.mulf %127, %131 : vector<1x8x8xf32>
    %133 = arith.truncf %132 : vector<1x8x8xf32> to vector<1x8x8xbf16>
    "tpu.trace_start"() <{level = 10 : i32, message = "bqk,bkd->bqd"}> : () -> ()
    %cst_31 = arith.constant dense<0.000000e+00> : vector<1x8x8xf32>
    %134 = tpu.matmul %133, %115, %cst_31 {dimension_numbers = #tpu.dot_dimension_numbers<[2], [1], [1], [2], [0, 0, 0, 1, 1, 2], [0], [0]>} : vector<1x8x8xbf16>, vector<1x8x8xbf16>, vector<1x8x8xf32> -> vector<1x8x8xf32>
    "tpu.trace_stop"() : () -> ()
    %135 = vector.shape_cast %134 : vector<1x8x8xf32> to vector<8x8xf32>
    %136 = tpu.concatenate %48, %77, %106, %135 in 1 : vector<8x8xf32>, vector<8x8xf32>, vector<8x8xf32>, vector<8x8xf32> -> vector<8x32xf32>
    %137 = arith.truncf %136 : vector<8x32xf32> to vector<8x32xbf16>
    %c0_32 = arith.constant 0 : index
    %c0_33 = arith.constant 0 : index
    %c0_34 = arith.constant 0 : index
    %138 = vector.load %arg5[%c0_32, %c0_33, %c0_34] : memref<1x32x32xbf16, #tpu.memory_space<vmem>>, vector<1x32x32xbf16>
    %139 = vector.shape_cast %138 : vector<1x32x32xbf16> to vector<32x32xbf16>
    %cst_35 = arith.constant dense<0.000000e+00> : vector<8x32xf32>
    %140 = tpu.matmul %137, %139, %cst_35 {dimension_numbers = #tpu.dot_dimension_numbers<[1], [0], [0], [1], [0, 0, 1, 1], [], []>} : vector<8x32xbf16>, vector<32x32xbf16>, vector<8x32xf32> -> vector<8x32xf32>
    %141 = arith.addf %140, %3 : vector<8x32xf32>
    %c0_36 = arith.constant 0 : index
    %c0_37 = arith.constant 0 : index
    %c0_38 = arith.constant 0 : index
    %142 = vector.load %arg6[%c0_36, %c0_37, %c0_38] : memref<1x1x32xf32, #tpu.memory_space<vmem>>, vector<1x1x32xf32>
    %143 = vector.shape_cast %142 : vector<1x1x32xf32> to vector<1x32xf32>
    %c0_39 = arith.constant 0 : index
    %c0_40 = arith.constant 0 : index
    %c0_41 = arith.constant 0 : index
    %144 = vector.load %arg7[%c0_39, %c0_40, %c0_41] : memref<1x1x32xf32, #tpu.memory_space<vmem>>, vector<1x1x32xf32>
    %145 = vector.shape_cast %144 : vector<1x1x32xf32> to vector<1x32xf32>
    %cst_42 = arith.constant dense<0.000000e+00> : vector<8xf32>
    %146 = vector.multi_reduction <add>, %141, %cst_42 [1] : vector<8x32xf32> to vector<8xf32>
    %147 = vector.shape_cast %146 : vector<8xf32> to vector<8x1xf32>
    %148 = arith.mulf %141, %141 : vector<8x32xf32>
    %cst_43 = arith.constant dense<0.000000e+00> : vector<8xf32>
    %149 = vector.multi_reduction <add>, %148, %cst_43 [1] : vector<8x32xf32> to vector<8xf32>
    %150 = vector.shape_cast %149 : vector<8xf32> to vector<8x1xf32>
    %cst_44 = arith.constant 3.125000e-02 : f32
    %151 = vector.broadcast %cst_44 : f32 to vector<8x1xf32>
    %152 = arith.mulf %147, %151 : vector<8x1xf32>
    %cst_45 = arith.constant 3.125000e-02 : f32
    %153 = vector.broadcast %cst_45 : f32 to vector<8x1xf32>
    %154 = arith.mulf %150, %153 : vector<8x1xf32>
    %155 = arith.mulf %152, %152 : vector<8x1xf32>
    %156 = arith.subf %154, %155 : vector<8x1xf32>
    %157 = vector.broadcast %152 : vector<8x1xf32> to vector<8x32xf32>
    %158 = arith.subf %141, %157 : vector<8x32xf32>
    %cst_46 = arith.constant 9.99999974E-6 : f32
    %159 = vector.broadcast %cst_46 : f32 to vector<8x1xf32>
    %160 = arith.addf %156, %159 : vector<8x1xf32>
    %161 = math.rsqrt %160 : vector<8x1xf32>
    %162 = vector.broadcast %161 : vector<8x1xf32> to vector<8x32xf32>
    %163 = arith.mulf %158, %162 : vector<8x32xf32>
    %164 = vector.broadcast %143 : vector<1x32xf32> to vector<8x32xf32>
    %165 = arith.mulf %163, %164 : vector<8x32xf32>
    %166 = vector.broadcast %145 : vector<1x32xf32> to vector<8x32xf32>
    %167 = arith.addf %165, %166 : vector<8x32xf32>
    %168 = arith.truncf %167 : vector<8x32xf32> to vector<8x32xbf16>
    %c0_47 = arith.constant 0 : index
    %c0_48 = arith.constant 0 : index
    %c0_49 = arith.constant 0 : index
    %169 = vector.load %arg8[%c0_47, %c0_48, %c0_49] : memref<1x32x64xbf16, #tpu.memory_space<vmem>>, vector<1x32x64xbf16>
    %170 = vector.shape_cast %169 : vector<1x32x64xbf16> to vector<32x64xbf16>
    %cst_50 = arith.constant dense<0.000000e+00> : vector<8x64xf32>
    %171 = tpu.matmul %168, %170, %cst_50 {dimension_numbers = #tpu.dot_dimension_numbers<[1], [0], [0], [1], [0, 0, 1, 1], [], []>} : vector<8x32xbf16>, vector<32x64xbf16>, vector<8x64xf32> -> vector<8x64xf32>
    %c0_51 = arith.constant 0 : index
    %c0_52 = arith.constant 0 : index
    %c0_53 = arith.constant 0 : index
    %172 = vector.load %arg9[%c0_51, %c0_52, %c0_53] : memref<1x1x64xf32, #tpu.memory_space<vmem>>, vector<1x1x64xf32>
    %173 = vector.shape_cast %172 : vector<1x1x64xf32> to vector<1x64xf32>
    %174 = vector.broadcast %173 : vector<1x64xf32> to vector<8x64xf32>
    %175 = arith.addf %171, %174 : vector<8x64xf32>
    %cst_54 = arith.constant 0.000000e+00 : f32
    %176 = vector.broadcast %cst_54 : f32 to vector<8x64xf32>
    %177 = arith.maximumf %175, %176 : vector<8x64xf32>
    %178 = arith.truncf %177 : vector<8x64xf32> to vector<8x64xbf16>
    %c0_55 = arith.constant 0 : index
    %c0_56 = arith.constant 0 : index
    %c0_57 = arith.constant 0 : index
    %179 = vector.load %arg10[%c0_55, %c0_56, %c0_57] : memref<1x64x32xbf16, #tpu.memory_space<vmem>>, vector<1x64x32xbf16>
    %180 = vector.shape_cast %179 : vector<1x64x32xbf16> to vector<64x32xbf16>
    %cst_58 = arith.constant dense<0.000000e+00> : vector<8x32xf32>
    %181 = tpu.matmul %178, %180, %cst_58 {dimension_numbers = #tpu.dot_dimension_numbers<[1], [0], [0], [1], [0, 0, 1, 1], [], []>} : vector<8x64xbf16>, vector<64x32xbf16>, vector<8x32xf32> -> vector<8x32xf32>
    %c0_59 = arith.constant 0 : index
    %c0_60 = arith.constant 0 : index
    %c0_61 = arith.constant 0 : index
    %182 = vector.load %arg11[%c0_59, %c0_60, %c0_61] : memref<1x1x32xf32, #tpu.memory_space<vmem>>, vector<1x1x32xf32>
    %183 = vector.shape_cast %182 : vector<1x1x32xf32> to vector<1x32xf32>
    %184 = vector.broadcast %183 : vector<1x32xf32> to vector<8x32xf32>
    %185 = arith.addf %181, %184 : vector<8x32xf32>
    %186 = arith.addf %185, %167 : vector<8x32xf32>
    %c0_62 = arith.constant 0 : index
    %c0_63 = arith.constant 0 : index
    %c0_64 = arith.constant 0 : index
    %187 = vector.load %arg12[%c0_62, %c0_63, %c0_64] : memref<1x1x32xf32, #tpu.memory_space<vmem>>, vector<1x1x32xf32>
    %188 = vector.shape_cast %187 : vector<1x1x32xf32> to vector<1x32xf32>
    %c0_65 = arith.constant 0 : index
    %c0_66 = arith.constant 0 : index
    %c0_67 = arith.constant 0 : index
    %189 = vector.load %arg13[%c0_65, %c0_66, %c0_67] : memref<1x1x32xf32, #tpu.memory_space<vmem>>, vector<1x1x32xf32>
    %190 = vector.shape_cast %189 : vector<1x1x32xf32> to vector<1x32xf32>
    %cst_68 = arith.constant dense<0.000000e+00> : vector<8xf32>
    %191 = vector.multi_reduction <add>, %186, %cst_68 [1] : vector<8x32xf32> to vector<8xf32>
    %192 = vector.shape_cast %191 : vector<8xf32> to vector<8x1xf32>
    %193 = arith.mulf %186, %186 : vector<8x32xf32>
    %cst_69 = arith.constant dense<0.000000e+00> : vector<8xf32>
    %194 = vector.multi_reduction <add>, %193, %cst_69 [1] : vector<8x32xf32> to vector<8xf32>
    %195 = vector.shape_cast %194 : vector<8xf32> to vector<8x1xf32>
    %cst_70 = arith.constant 3.125000e-02 : f32
    %196 = vector.broadcast %cst_70 : f32 to vector<8x1xf32>
    %197 = arith.mulf %192, %196 : vector<8x1xf32>
    %cst_71 = arith.constant 3.125000e-02 : f32
    %198 = vector.broadcast %cst_71 : f32 to vector<8x1xf32>
    %199 = arith.mulf %195, %198 : vector<8x1xf32>
    %200 = arith.mulf %197, %197 : vector<8x1xf32>
    %201 = arith.subf %199, %200 : vector<8x1xf32>
    %202 = vector.broadcast %197 : vector<8x1xf32> to vector<8x32xf32>
    %203 = arith.subf %186, %202 : vector<8x32xf32>
    %cst_72 = arith.constant 9.99999974E-6 : f32
    %204 = vector.broadcast %cst_72 : f32 to vector<8x1xf32>
    %205 = arith.addf %201, %204 : vector<8x1xf32>
    %206 = math.rsqrt %205 : vector<8x1xf32>
    %207 = vector.broadcast %206 : vector<8x1xf32> to vector<8x32xf32>
    %208 = arith.mulf %203, %207 : vector<8x32xf32>
    %209 = vector.broadcast %188 : vector<1x32xf32> to vector<8x32xf32>
    %210 = arith.mulf %208, %209 : vector<8x32xf32>
    %211 = vector.broadcast %190 : vector<1x32xf32> to vector<8x32xf32>
    %212 = arith.addf %210, %211 : vector<8x32xf32>
    %c0_73 = arith.constant 0 : index
    %c0_74 = arith.constant 0 : index
    %213 = vector.load %arg14[%c0_73, %c0_74] : memref<8x32xf32, #tpu.memory_space<vmem>>, vector<8x32xf32>
    tpu.vector_store %arg14[%c0_73, %c0_74], %212 {strides = array<i32>} : memref<8x32xf32, #tpu.memory_space<vmem>>, vector<8x32xf32>,
    return
  }
  func.func @transform_0(%arg0: i32, %arg1: i32, %arg2: memref<2xi32, #tpu.memory_space<smem>>) -> (i32, i32) {
    %c0_i32 = arith.constant 0 : i32
    %c0_i32_0 = arith.constant 0 : i32
    return %arg0, %c0_i32 : i32, i32
  }
  func.func @transform_1(%arg0: i32, %arg1: i32, %arg2: memref<2xi32, #tpu.memory_space<smem>>) -> (i32, i32, i32) {
    %c0_i32 = arith.constant 0 : i32
    %c0_i32_0 = arith.constant 0 : i32
    %c0_i32_1 = arith.constant 0 : i32
    return %arg1, %c0_i32, %c0_i32_0 : i32, i32, i32
  }
  func.func @transform_2(%arg0: i32, %arg1: i32, %arg2: memref<2xi32, #tpu.memory_space<smem>>) -> (i32, i32, i32) {
    %c0_i32 = arith.constant 0 : i32
    %c0_i32_0 = arith.constant 0 : i32
    %c0_i32_1 = arith.constant 0 : i32
    return %arg1, %c0_i32, %c0_i32_0 : i32, i32, i32
  }
  func.func @transform_3(%arg0: i32, %arg1: i32, %arg2: memref<2xi32, #tpu.memory_space<smem>>) -> (i32, i32, i32) {
    %c0_i32 = arith.constant 0 : i32
    %c0_i32_0 = arith.constant 0 : i32
    %c0_i32_1 = arith.constant 0 : i32
    return %arg1, %c0_i32, %c0_i32_0 : i32, i32, i32
  }
  func.func @transform_4(%arg0: i32, %arg1: i32, %arg2: memref<2xi32, #tpu.memory_space<smem>>) -> (i32, i32, i32) {
    %c0_i32 = arith.constant 0 : i32
    %c0_i32_0 = arith.constant 0 : i32
    %c0_i32_1 = arith.constant 0 : i32
    return %arg1, %c0_i32, %c0_i32_0 : i32, i32, i32
  }
  func.func @transform_5(%arg0: i32, %arg1: i32, %arg2: memref<2xi32, #tpu.memory_space<smem>>) -> (i32, i32, i32) {
    %c0_i32 = arith.constant 0 : i32
    %c0_i32_0 = arith.constant 0 : i32
    %c0_i32_1 = arith.constant 0 : i32
    return %arg1, %c0_i32, %c0_i32_0 : i32, i32, i32
  }
  func.func @transform_6(%arg0: i32, %arg1: i32, %arg2: memref<2xi32, #tpu.memory_space<smem>>) -> (i32, i32, i32) {
    %c0_i32 = arith.constant 0 : i32
    %c0_i32_0 = arith.constant 0 : i32
    %c0_i32_1 = arith.constant 0 : i32
    return %arg1, %c0_i32, %c0_i32_0 : i32, i32, i32
  }
  func.func @transform_7(%arg0: i32, %arg1: i32, %arg2: memref<2xi32, #tpu.memory_space<smem>>) -> (i32, i32, i32) {
    %c0_i32 = arith.constant 0 : i32
    %c0_i32_0 = arith.constant 0 : i32
    %c0_i32_1 = arith.constant 0 : i32
    return %arg1, %c0_i32, %c0_i32_0 : i32, i32, i32
  }
  func.func @transform_8(%arg0: i32, %arg1: i32, %arg2: memref<2xi32, #tpu.memory_space<smem>>) -> (i32, i32, i32) {
    %c0_i32 = arith.constant 0 : i32
    %c0_i32_0 = arith.constant 0 : i32
    %c0_i32_1 = arith.constant 0 : i32
    return %arg1, %c0_i32, %c0_i32_0 : i32, i32, i32
  }
  func.func @transform_9(%arg0: i32, %arg1: i32, %arg2: memref<2xi32, #tpu.memory_space<smem>>) -> (i32, i32, i32) {
    %c0_i32 = arith.constant 0 : i32
    %c0_i32_0 = arith.constant 0 : i32
    %c0_i32_1 = arith.constant 0 : i32
    return %arg1, %c0_i32, %c0_i32_0 : i32, i32, i32
  }
  func.func @transform_10(%arg0: i32, %arg1: i32, %arg2: memref<2xi32, #tpu.memory_space<smem>>) -> (i32, i32, i32) {
    %c0_i32 = arith.constant 0 : i32
    %c0_i32_0 = arith.constant 0 : i32
    %c0_i32_1 = arith.constant 0 : i32
    return %arg1, %c0_i32, %c0_i32_0 : i32, i32, i32
  }
  func.func @transform_11(%arg0: i32, %arg1: i32, %arg2: memref<2xi32, #tpu.memory_space<smem>>) -> (i32, i32) {
    %c0_i32 = arith.constant 0 : i32
    %c0_i32_0 = arith.constant 0 : i32
    return %arg0, %c0_i32 : i32, i32
  }
}

</mosaic_0001>

<bundles_post_ra>
// kernel: tpu_custom_call.1
= control target key start
LH: loop header
LB: loop body
LE: loop exit
PB: predicated region body
PF: predicated region fallthrough
CT: control target
= control target key end

     0   :  { %s2029_s21 = smov [#allocation3]   ;;  %s2468_s0 = inlined_call_operand.hbm [shape: s32[2], index: 0, kind: input, shape index: {}]   ;;  %s2469_s1 = inlined_call_operand.hbm [shape: f32[16,32], index: 1, kind: input, shape index: {}]   ;;  %s2470_s2 = inlined_call_operand.vmem [shape: bf16[2,32,96], index: 2, kind: input, shape index: {}]   ;;  %s2471_s3 = inlined_call_operand.vmem [shape: bf16[2,32,32], index: 3, kind: input, shape index: {}]   ;;  %s2472_s4 = inlined_call_operand.vmem [shape: f32[2,1,32], index: 4, kind: input, shape index: {}]   ;;  %s2473_s5 = inlined_call_operand.vmem [shape: f32[2,1,32], index: 5, kind: input, shape index: {}]   ;;  %s2474_s6 = inlined_call_operand.vmem [shape: bf16[2,32,64], index: 6, kind: input, shape index: {}]   ;;  %s2475_s7 = inlined_call_operand.vmem [shape: f32[2,1,64], index: 7, kind: input, shape index: {}]   ;;  %s2476_s8 = inlined_call_operand.vmem [shape: bf16[2,64,32], index: 8, kind: input, shape index: {}]   ;;  %s2477_s9 = inlined_call_operand.vmem [shape: f32[2,1,32], index: 9, kind: input, shape index: {}]   ;;  %s2478_s10 = inlined_call_operand.vmem [shape: f32[2,1,32], index: 10, kind: input, shape index: {}]   ;;  %s2479_s11 = inlined_call_operand.vmem [shape: f32[2,1,32], index: 11, kind: input, shape index: {}]   ;;  %s2480_s12 = inlined_call_operand.hbm [shape: f32[16,32], index: 12, kind: output, shape index: {}]  }
   0x1   :  { %2494 = sst [smem:[#allocation23_spill]] %s2469_s1 }
   0x2   :  { %2495 = sst [smem:[#allocation24_spill]] %s2470_s2 }
   0x3   :  { %2496 = sst [smem:[#allocation25_spill]] %s2471_s3 }
   0x4   :  { %2497 = sst [smem:[#allocation26_spill]] %s2474_s6 }
   0x5   :  { %2498 = sst [smem:[#allocation27_spill]] %s2479_s11 }
   0x6   :  { %2499 = sst [smem:[#allocation28_spill]] %s2480_s12 }
   0x7   :  { %18 = dma.hbm_to_smem %s2468_s0, 16, %s2029_s21, [#allocation2] }
   0x8   :  { %1987 = dma.done.wait [#allocation2], 16 }
   0x9   :  { %1988 = vsyncadd [#allocation2], 4294967280 }
   0xa   :  { %20 = sfence }
   0xb   :  { %21 = vsyncpa [#allocation5], 0 }
   0xc   :  { %23 = vsyncpa [#allocation5 + $0x1], 0 }
   0xd   :  { %24 = vsyncpa [#allocation6], 0 }
   0xe   :  { %26 = vsyncpa [#allocation6 + $0x1], 0  ;;  %s2116_s24 = smov 0   ;;  %s2118_s25 = smov 0  }
   0xf   :  { %s2120_s26 = smov 0   ;;  %s2122_s27 = smov 0  }
  0x10   :  { %s2124_s28 = smov 0   ;;  %s2126_s29 = smov 0  }
  0x11   :  { %s2128_s0 = smov 0   ;;  %s2130_s30 = smov 0  }
  0x12 LB: > { %2500 = sst [smem:[#allocation11_spill]] %s1999_s24  ;;  %s1600_s13 = sadd.s32 4294967295, %s2027_s30   ;;  %s2027_s30 = sphi %s2130_s30, %s32_s30   ;;  %s2023_s0 = sphi %s2128_s0, %s2541_s0   ;;  %s2019_s29 = sphi %s2126_s29, %s2540_s29   ;;  %s2015_s28 = sphi %s2124_s28, %s2539_s28   ;;  %s2011_s27 = sphi %s2122_s27, %s2538_s27   ;;  %s2007_s26 = sphi %s2120_s26, %s2537_s26   ;;  %s2003_s25 = sphi %s2118_s25, %s2536_s25   ;;  %s1999_s24 = sphi %s2116_s24, %s2535_s24  }
  0x13   : > { %2501 = sst [smem:[#allocation12_spill]] %s2003_s25  ;;  %s1601_s14 = sadd.s32 4294967294, %s2027_s30  }
  0x14   : > { %2502 = sst [smem:[#allocation13_spill]] %s2007_s26  ;;  %s41_s15 = sadd.s32 1, %s2019_s29 }
  0x15   : > { %2503 = sst [smem:[#allocation14_spill]] %s2015_s28  ;;  %s44_s16 = sadd.s32 1, %s2023_s0 }
  0x16   : > { %2504 = sst [smem:[#allocation15_spill]] %s2019_s29  ;;  %p42_p0 = scmp.ge.s32.totalorder %s41_s15, 2 }
  0x17   : > { %2505 = sst [smem:[#allocation16_spill]] %s2023_s0  ;;  %s51_s17 = sadd.s32 1, %s2007_s26 }
  0x18   : > { %2506 = sst [smem:[#allocation17_spill]] %s2027_s30  ;;  %p58_p1 = scmp.ne.s32.totalorder %s2007_s26, %s2003_s25 }
  0x19   : > { %p59_p2 = scmp.eq.s32.totalorder %s2027_s30, 0  ;;  %s2543_s15 = smov (%p42_p0, %s41_s15), 0 }
  0x1a   : > { %2507 = sst [smem:[#allocation18_spill]] %s2543_s15  ;;  %s2545_s16 = smov (!%p42_p0, %s44_s16), %s2023_s0 }
  0x1b   : > { %p2167_p3 = por %p59_p2, %p58_p1  ;;  %p64_p4 = scmp.ne.s32.totalorder %s2003_s25, %s1999_s24 }
  0x1c   : > { %p46_p5 = scmp.ge.s32.totalorder %s2545_s16, 2  ;;  %p65_p6 = scmp.eq.s32.totalorder %s1600_s13, 0 }
  0x1d   : > { %p348_p7 = scmp.eq.s32.totalorder %s1600_s13, 3  ;;  %p354_p8 = scmp.eq.s32.totalorder %s1601_s14, 3 }
  0x1e   : > { %s2547_s16 = smov (%p46_p5, %s2545_s16), 0  ;;  %p2175_p9 = por %p65_p6, %p64_p4 }
  0x1f   : > { %2509 = sst [smem:[#allocation19_spill]] %s2547_s16  ;;  %p2179_p10 = por %p348_p7, %p58_p1 }
  0x20   : > { %s48_s21 = ssub.s32 %s2023_s0, %s2547_s16  ;;  %p2185_p11 = por %p354_p8, %p64_p4 }
  0x21   : > { %s2511_s20 = scalar_select %p2179_p10, 1, 0 }
  0x22   : > { %s2513_s22 = scalar_select %p2185_p11, 1, 0 }
  0x23   : > { %2512 = sst [smem:[#allocation20_spill]] %s2511_s20  ;;  %p49_p12 = scmp.eq.s32.totalorder %s48_s21, 0 }
  0x24   : > { %2514 = sst [smem:[#allocation21_spill]] %s2513_s22  ;;  %p1780_p13 = scmp.lt.s32.totalorder %s2027_s30, 4 }
  0x25   : > { %s374_s23 = sand.u32 1, %s2007_s26   ;;  %s1605_s15 = sshll.u32 %s2023_s0, 7 }
  0x26   : > { %s2192_s13 = scalar_select %p49_p12, %s2007_s26, %s51_s17  }
  0x27   : > { %s1604_s14 = sshll.u32 %s374_s23, 3  ;;  %s2516_s1 = sld [smem:[#allocation23_spill]] }
  0x28   : > { %2515 = sst [smem:[#allocation22_spill]] %s2192_s13  ;;  %s378_s28 = scalar_lea.vmem [#allocation4], %s1604_s14 }
  0x29   : > { %s385_s11 = sshll.u32 %s378_s28, 4  ;;  %p2200_p0 = pnand %p1780_p13, %p2167_p3  ;;  %s386_s11 = int_to_ptr.vmem [resolvable:$true] %s385_s11 }
  0x2a   : > { %p1606_p1 = scmp.ge.s32.totalorder %s2027_s30, 1  ;;  %p458_p2 = scmp.lt.s32.totalorder %s2027_s30, 5 }
  0x2b   : > { %s375_s21 = scalar_lea.sflag [#allocation5], %s374_s23  ;;  %p1903_p4 = pneg %p2200_p0 }
  0x2c   : > { %s1914_s17 = scalar_lea.vmem %s386_s11, 128  ;;  %s2030_s24 = smov [#allocation4]  }
  0x2d   : > { %s383_s12 = scalar_lea.hbm %s2516_s1, %s1605_s15  ;;  %p1915_p5 = scmp.ne.s32.totalorder %s386_s11, %s1914_s17 }
  0x2e   : > { %s1919_s29 = sshll.u32 %s2030_s24, 4  ;;  %s1920_s29 = int_to_ptr.vmem [resolvable:$false] %s1919_s29 }
  0x2f   : > { %p1917_p6 = pnand %p1915_p5, %p1903_p4  ;;  %s1921_s28 = scalar_lea.vmem %s1920_s29, 256 }
  0x30   : > { %p1922_p8 = scmp.lt.s32.totalorder %s386_s11, %s1920_s29  ;;  %p1923_p12 = scmp.lt.s32.totalorder %s1921_s28, %s1914_s17 }
  0x31   : > { %p1918_p7 = pneg %p1917_p6 }
  0x32   : > { %p1924_p3 = por %p1923_p12, %p1922_p8 }
  0x34   : > { %p1925_p13 = pnand %p1924_p3, %p1918_p7 }
  0x36   : > { %1928 = shalt.err (!%p1925_p13)
}
  0x37   : > { %1775 = dma.hbm_to_vmem [thread:$0]  (!%p2200_p0), %s383_s12, 128, %s386_s11, %s375_s21  }
  0x38   : > { %p459_p11 = pnand %p1606_p1, %p458_p2 }
  0x39   : > { %s2215_s15 = sand.u32 (!%p459_p11), 1, %s2003_s25  }
  0x3a   : > { %462 = sbr.rel (%p459_p11) target bundleno = 2233 (0x8b9), region = 64  ;;  %s1607_s18 = sshll.u32 (!%p459_p11), %s2215_s15, 3 }
  0x3b   : > { %s465_s23 = scalar_lea.sflag (!%p459_p11), [#allocation5], %s2215_s15  ;;  %s468_s14 = scalar_lea.vmem (!%p459_p11), [#allocation4], %s1607_s18 }
  0x3f   : > { %1990 = dma.done.wait (%p2175_p9), %s465_s23, 128  }
  0x40   : > { %1992 = vsyncadd (%p2175_p9), %s465_s23, 4294967168  ;;  %p545_p0 = scmp.lt.s32.totalorder %s2011_s27, 1  ;;  %s2518_s2 = sld [smem:[#allocation24_spill]] }
  0x41   : > { %s2519_s3 = sld [smem:[#allocation25_spill]]  ;;  %s2271_s16 = scalar_lea.vmem [#allocation7], %s1607_s18 }
  0x42   : > { %s2225_s11 = scalar_select %p545_p0, %s2011_s27, 1 }
  0x43   : > { %s2520_s6 = sld [smem:[#allocation26_spill]]  ;;  %p1617_p9 = scmp.ne.s32.totalorder %s2011_s27, 0 }
  0x44   : > { %s1650_s12 = sshll.u32 %s2225_s11, 4  ;;  %s568_s17 = scalar_lea.vmem %s2475_s7, %s2225_s11 }
  0x45   : > { %s1653_s19 = sshll.u32 %s2225_s11, 5  ;;  %s576_s0 = scalar_lea.vmem %s2477_s9, %s2225_s11 }
  0x46   : > { %s549_s29 = scalar_lea.vmem %s2518_s2, %s1650_s12  ;;  %s2257_s28 = scalar_lea.vmem %s2476_s8, %s1653_s19 }
  0x47   : > { %s2238_s1 = scalar_lea.vmem %s2519_s3, %s1650_s12  ;;  %s579_s25 = scalar_lea.vmem %s2478_s10, %s2225_s11 }
  0x49   : > { %s2247_s30 = scalar_lea.vmem %s2520_s6, %s1650_s12  ;;  %s2521_s6 = sld [smem:[#allocation27_spill]] }
  0x4b   : > { %587 = sbr.rel (%p1617_p9) target bundleno = 82 (0x52), region = 72 }
  0x4f   : > { %s582_s20 = scalar_lea.vmem %s2521_s6, %s2225_s11 }
  0x50   : > { %v588_v0 = vld [vmem:[%s468_s14] sm:$0xff]  ;;  %vm589_vm0 = vcmask 261120  }
  0x51   : > { %590 = vst.msk [vmem:[%s2271_s16] sm:$0xff] %vm589_vm0, %v588_v0 }
  0x52 PF: > { %v1863_v1 = vld [vmem:[%s549_s29 + $0x8] sm:$0xff]   ;;  %v2031_v2 = vmov 0.0   ;;  %v1864_v3 = vld [vmem:[%s549_s29] sm:$0xff]   ;;  %vm2032_vm1 = vmmov 0   ;;  %vm609_vm2 = vcmask 261120   ;;  %s2033_s2 = smov 120   ;;  %v653_v22 = vlaneseq }
  0x53   : > { %1684 = vmatprep.subr.bf16.mxu0 %v2031_v2  ;;  %1692 = vmatprep.subr.bf16.mxu1 %v2031_v2  ;;  %s2034_s3 = smov 96   ;;  %s2035_s6 = smov 80   ;;  %vm662_vm3 = vcmask 64512   ;;  %vm730_vm5 = vcmask 1043456   ;;  %vm1123_vm6 = vcmask 130048   ;;  %vm1125_vm7 = vcmask 195584  }
  0x54   : > { %1685 = vmatpush3.bf16.msra.mxu0 %v1863_v1  ;;  %1688 = vmatprep.mubr.msk.bf16.mxu0 %vm2032_vm1, %v2031_v2  ;;  %s2036_s26 = smov 88   ;;  %s2037_s27 = smov 72   ;;  %v654_v23 = vand.u32 127, %v653_v22  ;;  %vm1326_vm8 = vcmask 523264  }
  0x55   : > { %1686 = vmatprep.subr.bf16.mxu0 %v2031_v2  ;;  %1694 = vmatprep.mubr.msk.bf16.mxu1 %vm2032_vm1, %v2031_v2  ;;  %s2038_s18 = smov 112   ;;  %s2039_s14 = smov 104  }
  0x56   : > { %s2522_s29 = sld [smem:[#allocation14_spill]]  ;;  %s2040_s19 = smov 56  }
  0x57   : > { %s2041_s24 = smov 64   ;;  %s2042_s23 = smov 40  }
  0x58   : > { %v2280_v4 = vld [vmem:[%s2271_s16] sm:$0xff]  ;;  %1687 = vmatpush3.bf16.msra.mxu0 %v1864_v3  ;;  %s2043_s13 = smov 48   ;;  %s2044_s22 = smov 8  }
  0x59   : > { %v592_v5 = vpack.c.bf16 %v2280_v4, %v2280_v4  ;;  %1698 = vmatprep.subr.bf16.mxu0 %v2031_v2  ;;  %s2045_s12 = smov 16  }
  0x5b   : > { %1689 = vmatmul.mubr.msk.bf16.vlgmr.msra.gmra.mxu0 %vm609_vm2, %v592_v5 }
  0x5c   : > { %1700 = vmatprep.mubr.msk.bf16.mxu0 %vm2032_vm1, %v2031_v2  ;;  %s655_s21 = sld [smem:[#allocation3 + %s2522_s29]] }
  0x62   : > { %v656_v24 = vstv %s655_s21 }
  0x63   : > { %vm2322_vm4 = vcmp.lt.s32.totalorder %v654_v23, %v656_v24 }
 0x11b   : > { %v647_v6 = vpop.f32.mrf.mxu0 }
 0x11c   : > { %v2291_v7 = vpack.c.bf16 %v647_v6, %v647_v6 }
 0x11d   : > { %v1690_v8 = vpop.f32.mrf.mxu0 }
 0x11e   : > { %774 = vrot.lane.b32.xlu1 %v2291_v7, %s2033_s2  ;;  %660 = vrot.lane.b32.xlu0 %v2291_v7, %s2034_s3  ;;  %s2046_s2 = smov 24   ;;  %s2525_s3 = scalar_lea.vmem %s2472_s4, %s2225_s11 }
 0x11f   : > { %v650_v9 = vpop.f32.mrf.mxu0 }
 0x121   : > { %v1691_v10 = vpop.f32.mrf.mxu0 }
 0x122   : > { %888 = vrot.lane.b32.xlu1 %v2291_v7, %s2035_s6  ;;  %776 = vrot.lane.b32.xlu0 %v2291_v7, %s2036_s26  ;;  %s1404_s26 = scalar_lea.sflag [#allocation6], %s2215_s15 }
 0x126   : > { %1000 = vrot.lane.b32.xlu1 %v2291_v7, %s2037_s27  ;;  %886 = vrot.lane.b32.xlu0 %v2291_v7, %s2038_s18  ;;  %s2526_s27 = scalar_lea.vmem %s2473_s5, %s2225_s11 }
 0x12a   : > { %998 = vrot.lane.b32.xlu0 %v2291_v7, %s2039_s14 }
 0x190   : > { %v661_v11 = vpop.permute.xlu0 %660  ;;  %v775_v14 = vpop.permute.xlu1 %774 }
 0x191   : > { %v667_v12 = vsel %vm662_vm3, %v661_v11, 0 }
 0x192   : > { %1693 = vmatpush3.bf16.xpose.msra.mxu1 %v667_v12 }
 0x193   : > { %1704 = vmatprep.subr.bf16.mxu1 %v2031_v2 }
 0x194   : > { %v777_v13 = vpop.permute.xlu0 %776  ;;  %v889_v16 = vpop.permute.xlu1 %888 }
 0x195   : > { %v782_v15 = vsel %vm662_vm3, %v777_v13, 0  ;;  %v894_v17 = vsel %vm662_vm3, %v889_v16, 0 }
 0x198   : > { %v1001_v18 = vpop.permute.xlu1 %1000  ;;  %v887_v19 = vpop.permute.xlu0 %886 }
 0x199   : > { %1695 = vmatmul.mubr.msk.bf16.vlgmr.msra.gmra.mxu1 %vm662_vm3, %v2291_v7  ;;  %v1006_v20 = vsel %vm662_vm3, %v1001_v18, 0 }
 0x19a   : > { %1705 = vmatpush3.bf16.xpose.msra.mxu1 %v782_v15  ;;  %1706 = vmatprep.mubr.msk.bf16.mxu1 %vm2032_vm1, %v2031_v2 }
 0x19b   : > { %1716 = vmatprep.subr.bf16.mxu1 %v2031_v2 }
 0x19c   : > { %v999_v21 = vpop.permute.xlu0 %998 }
 0x1a1   : > { %1707 = vmatmul.mubr.msk.bf16.vlgmr.msra.gmra.mxu1 %vm662_vm3, %v775_v14 }
 0x1a2   : > { %1717 = vmatpush3.bf16.xpose.msra.mxu1 %v894_v17  ;;  %1718 = vmatprep.mubr.msk.bf16.mxu1 %vm2032_vm1, %v2031_v2 }
 0x1a3   : > { %1728 = vmatprep.subr.bf16.mxu1 %v2031_v2 }
 0x1a9   : > { %1719 = vmatmul.mubr.msk.bf16.vlgmr.msra.gmra.mxu1 %vm662_vm3, %v887_v19 }
 0x1aa   : > { %1729 = vmatpush3.bf16.xpose.msra.mxu1 %v1006_v20  ;;  %1730 = vmatprep.mubr.msk.bf16.mxu1 %vm2032_vm1, %v2031_v2 }
 0x1ab   : > { %1740 = vmatprep.subr.bf16.mxu1 %v2031_v2 }
 0x1b1   : > { %1731 = vmatmul.mubr.msk.bf16.vlgmr.msra.gmra.mxu1 %vm662_vm3, %v999_v21 }
 0x1b2   : > { %1744 = vmatprep.mubr.msk.bf16.mxu1 %vm2032_vm1, %v2031_v2 }
 0x259   : > { %v703_v25 = vpop.f32.mrf.mxu1 }
 0x25a   : > { %v709_v27 = vmul.f32 0.35355338, %v703_v25 }
 0x25b   : > { %v1696_v28 = vpop.f32.mrf.mxu1 }
 0x25c   : > { %v712_v29 = vsel %vm2322_vm4, %v709_v27, -1000000.0 }
 0x25d   : > { %v706_v30 = vpop.f32.mrf.mxu1  ;;  %v713_v31 = vsel %vm662_vm3, %v712_v29, -inf }
 0x25e   : > { %714 = vmax.xlane.f32.xlu1 %v713_v31 }
 0x25f   : > { %v1697_v32 = vpop.f32.mrf.mxu1 }
 0x261   : > { %v818_v33 = vpop.f32.mrf.mxu1 }
 0x262   : > { %v824_v34 = vmul.f32 0.35355338, %v818_v33 }
 0x263   : > { %v1708_v35 = vpop.f32.mrf.mxu1 }
 0x264   : > { %v825_v36 = vsel %vm2322_vm4, %v824_v34, -1000000.0 }
 0x265   : > { %v821_v37 = vpop.f32.mrf.mxu1  ;;  %v826_v38 = vsel %vm662_vm3, %v825_v36, -inf }
 0x266   : > { %827 = vmax.xlane.f32.xlu0 %v826_v38 }
 0x267   : > { %v1709_v39 = vpop.f32.mrf.mxu1 }
 0x269   : > { %v930_v40 = vpop.f32.mrf.mxu1 }
 0x26a   : > { %v936_v41 = vmul.f32 0.35355338, %v930_v40 }
 0x26b   : > { %v1720_v42 = vpop.f32.mrf.mxu1 }
 0x26c   : > { %v937_v43 = vsel %vm2322_vm4, %v936_v41, -1000000.0 }
 0x26d   : > { %v933_v44 = vpop.f32.mrf.mxu1  ;;  %v938_v45 = vsel %vm662_vm3, %v937_v43, -inf }
 0x26e   : > { %939 = vmax.xlane.f32.xlu0 %v938_v45  ;;  %v1865_v44 = vld [vmem:[%s2238_s1 + $0x8] sm:$0xff]   ;;  %v1866_v45 = vld [vmem:[%s2238_s1] sm:$0xff]  }
 0x26f   : > { %v1721_v46 = vpop.f32.mrf.mxu1  ;;  %1741 = vmatpush3.bf16.msra.mxu1 %v1865_v44 }
 0x270   : > { %1742 = vmatprep.subr.bf16.mxu1 %v2031_v2 }
 0x271   : > { %v1042_v47 = vpop.f32.mrf.mxu1 }
 0x272   : > { %v1048_v48 = vmul.f32 0.35355338, %v1042_v47 }
 0x273   : > { %v1732_v49 = vpop.f32.mrf.mxu1  ;;  %1743 = vmatpush3.bf16.msra.mxu1 %v1866_v45 }
 0x274   : > { %v1049_v50 = vsel %vm2322_vm4, %v1048_v48, -1000000.0  ;;  %1756 = vmatprep.subr.bf16.mxu1 %v2031_v2 }
 0x275   : > { %v1045_v51 = vpop.f32.mrf.mxu1  ;;  %v1050_v52 = vsel %vm662_vm3, %v1049_v50, -inf }
 0x276   : > { %1051 = vmax.xlane.f32.xlu1 %v1050_v52 }
 0x277   : > { %v1733_v53 = vpop.f32.mrf.mxu1 }
 0x2e7   : > { %v715_v54 = vpop.xlane.xlu1 %714 }
 0x2e8   : > { %v716_v55 = vsub.f32 %v712_v29, %v715_v54 }
 0x2ea   : > { %v717_v56 = vmul.f32 1.442695, %v716_v55 }
 0x2ec   : > { %1873 = vpow2.f32 %v717_v56 }
 0x2ef   : > { %v828_v57 = vpop.xlane.xlu0 %827 }
 0x2f0   : > { %v829_v58 = vsub.f32 %v825_v36, %v828_v57 }
 0x2f2   : > { %v830_v59 = vmul.f32 1.442695, %v829_v58 }
 0x2f4   : > { %1875 = vpow2.f32 %v830_v59 }
 0x2f7   : > { %v940_v60 = vpop.xlane.xlu0 %939 }
 0x2f8   : > { %v941_v61 = vsub.f32 %v937_v43, %v940_v60 }
 0x2f9   : > { %v1874_v62 = vpop.eup %1873 }
 0x2fa   : > { %v942_v63 = vmul.f32 1.442695, %v941_v61  ;;  %v719_v0 = vsel %vm662_vm3, %v1874_v62, 0.0 }
 0x2fb   : > { %720 = vadd.xlane.f32.xlu0 %v719_v0 }
 0x2fc   : > { %1877 = vpow2.f32 %v942_v63 }
 0x2ff   : > { %v1052_v8 = vpop.xlane.xlu1 %1051 }
 0x300   : > { %v1053_v9 = vsub.f32 %v1049_v50, %v1052_v8  ;;  %v1867_v8 = vld [vmem:[%s2247_s30 + $0x8] sm:$0xff]  }
 0x301   : > { %v1876_v1 = vpop.eup %1875 }
 0x302   : > { %v832_v3 = vsel %vm662_vm3, %v1876_v1, 0.0  ;;  %v1054_v10 = vmul.f32 1.442695, %v1053_v9  ;;  %v1868_v9 = vld [vmem:[%s2247_s30] sm:$0xff]   ;;  %s2529_s30 = sld [smem:[#allocation28_spill]] }
 0x303   : > { %833 = vadd.xlane.f32.xlu1 %v832_v3 }
 0x304   : > { %1879 = vpow2.f32 %v1054_v10  ;;  %v1869_v10 = vld [vmem:[%s2257_s28 + $0x18] sm:$0xff]  }
 0x309   : > { %v1878_v5 = vpop.eup %1877 }
 0x30a   : > { %v944_v6 = vsel %vm662_vm3, %v1878_v5, 0.0 }
 0x30b   : > { %945 = vadd.xlane.f32.xlu0 %v944_v6 }
 0x311   : > { %v1880_v11 = vpop.eup %1879 }
 0x312   : > { %v1056_v12 = vsel %vm662_vm3, %v1880_v11, 0.0 }
 0x314   : > { %838 = vrot.lane.b32.xlu1 %v2291_v7, %s2040_s19 }
 0x321   : > { %725 = vrot.lane.b32.xlu0 %v2291_v7, %s2041_s24 }
 0x325   : > { %1062 = vrot.lane.b32.xlu0 %v2291_v7, %s2042_s23 }
 0x338   : > { %1057 = vadd.xlane.f32.xlu1 %v1056_v12 }
 0x349   : > { %950 = vrot.lane.b32.xlu1 %v2291_v7, %s2043_s13 }
 0x384   : > { %v721_v13 = vpop.xlane.xlu0 %720 }
 0x385   : > { %1881 = vrcp.f32 %v721_v13 }
 0x38c   : > { %v834_v14 = vpop.xlane.xlu1 %833 }
 0x38d   : > { %1883 = vrcp.f32 %v834_v14 }
 0x390   : > { %v839_v20 = vpop.permute.xlu1 %838 }
 0x391   : > { %v844_v23 = vsel %vm730_vm5, %v839_v20, 0  ;;  %v1632_v20 = vld [vmem:[%s2525_s3] ss:$0 sm:$0xff]  ;;  %s2530_s3 = smov %s2529_s30 }
 0x392   : > { %v1882_v15 = vpop.eup %1881 }
 0x393   : > { %v723_v17 = vmul.f32 %v1882_v15, %v1874_v62 }
 0x394   : > { %v946_v16 = vpop.xlane.xlu0 %945 }
 0x395   : > { %v724_v21 = vpack.c.bf16 %v723_v17, %v723_v17  ;;  %1885 = vrcp.f32 %v946_v16 }
 0x398   : > { %v726_v18 = vpop.permute.xlu0 %725 }
 0x399   : > { %v732_v19 = vsel %vm730_vm5, %v726_v18, 0 }
 0x39a   : > { %1699 = vmatpush3.bf16.msra.mxu0 %v732_v19  ;;  %v1884_v22 = vpop.eup %1883 }
 0x39b   : > { %1710 = vmatprep.subr.bf16.mxu0 %v2031_v2  ;;  %v836_v7 = vmul.f32 %v1884_v22, %v1876_v1  ;;  %v1633_v22 = vld [vmem:[%s2526_s27] ss:$0 sm:$0xff] }
 0x39c   : > { %v1063_v30 = vpop.permute.xlu0 %1062 }
 0x39d   : > { %1701 = vmatmul.mubr.msk.bf16.vlgmr.msra.gmra.mxu0 %vm662_vm3, %v724_v21  ;;  %v837_v24 = vpack.c.bf16 %v836_v7, %v836_v7  ;;  %v1068_v32 = vsel %vm730_vm5, %v1063_v30, 0 }
 0x39e   : > { %1711 = vmatpush3.bf16.msra.mxu0 %v844_v23  ;;  %1712 = vmatprep.mubr.msk.bf16.mxu0 %vm2032_vm1, %v2031_v2 }
 0x39f   : > { %1722 = vmatprep.subr.bf16.mxu0 %v2031_v2 }
 0x3a2   : > { %v1886_v25 = vpop.eup %1885 }
 0x3a3   : > { %v948_v27 = vmul.f32 %v1886_v25, %v1878_v5  ;;  %v1871_v25 = vld [vmem:[%s2257_s28 + $0x8] sm:$0xff]  }
 0x3a5   : > { %1713 = vmatmul.mubr.msk.bf16.vlgmr.msra.gmra.mxu0 %vm662_vm3, %v837_v24  ;;  %v949_v31 = vpack.c.bf16 %v948_v27, %v948_v27  ;;  %v1634_v27 = vld [vmem:[%s568_s17] ss:$0 sm:$0xff] }
 0x3a6   : > { %1724 = vmatprep.mubr.msk.bf16.mxu0 %vm2032_vm1, %v2031_v2 }
 0x3c1   : > { %v1058_v26 = vpop.xlane.xlu1 %1057 }
 0x3c2   : > { %1887 = vrcp.f32 %v1058_v26  ;;  %v1872_v26 = vld [vmem:[%s2257_s28] sm:$0xff]  }
 0x3c5   : > { %v951_v28 = vpop.permute.xlu1 %950 }
 0x3c6   : > { %v956_v29 = vsel %vm730_vm5, %v951_v28, 0 }
 0x3c7   : > { %1723 = vmatpush3.bf16.msra.mxu0 %v956_v29 }
 0x3c8   : > { %1734 = vmatprep.subr.bf16.mxu0 %v2031_v2 }
 0x3ca   : > { %1725 = vmatmul.mubr.msk.bf16.vlgmr.msra.gmra.mxu0 %vm662_vm3, %v949_v31 }
 0x3cb   : > { %1735 = vmatpush3.bf16.msra.mxu0 %v1068_v32  ;;  %1736 = vmatprep.mubr.msk.bf16.mxu0 %vm2032_vm1, %v2031_v2 }
 0x3cc   : > { %1748 = vmatprep.subr.bf16.mxu0 %v2031_v2 }
 0x3cf   : > { %v1888_v33 = vpop.eup %1887 }
 0x3d0   : > { %v1060_v34 = vmul.f32 %v1888_v33, %v1880_v11 }
 0x3d2   : > { %v1061_v35 = vpack.c.bf16 %v1060_v34, %v1060_v34 }
 0x3d4   : > { %1737 = vmatmul.mubr.msk.bf16.vlgmr.msra.gmra.mxu0 %vm662_vm3, %v1061_v35 }
 0x3d5   : > { %1752 = vmatprep.mubr.msk.bf16.mxu0 %vm2032_vm1, %v2031_v2  ;;  %1749 = vmatpush3.bf16.msra.mxu0 %v1867_v8 }
 0x3d6   : > { %1750 = vmatprep.subr.bf16.mxu0 %v2031_v2 }
 0x3d9   : > { %1751 = vmatpush3.bf16.msra.mxu0 %v1868_v9 }
 0x45d   : > { %v768_v36 = vpop.f32.mrf.mxu0 }
 0x45f   : > { %v1702_v37 = vpop.f32.mrf.mxu0 }
 0x461   : > { %v771_v38 = vpop.f32.mrf.mxu0 }
 0x463   : > { %v1703_v39 = vpop.f32.mrf.mxu0 }
 0x465   : > { %v880_v40 = vpop.f32.mrf.mxu0 }
 0x466   : > { %1111 = vrot.lane.b32.xlu1 %v880_v40, %s2044_s22  ;;  %s1647_s22 = sshll.u32 %s2522_s29, 7 }
 0x467   : > { %v1714_v41 = vpop.f32.mrf.mxu0  ;;  %s1415_s6 = scalar_lea.hbm %s2529_s30, %s1647_s22 }
 0x469   : > { %v883_v42 = vpop.f32.mrf.mxu0 }
 0x46b   : > { %v1715_v43 = vpop.f32.mrf.mxu0 }
 0x48a   : > { %v992_v46 = vpop.f32.mrf.mxu0 }
 0x48b   : > { %1115 = vrot.lane.b32.xlu0 %v992_v46, %s2045_s12  ;;  %s1417_s12 = sshll.u32 %s2271_s16, 4  ;;  %s1418_s12 = int_to_ptr.vmem [resolvable:$true] %s1417_s12 }
 0x48c   : > { %v1726_v47 = vpop.f32.mrf.mxu0  ;;  %s1929_s27 = scalar_lea.vmem %s1418_s12, 128 }
 0x48d   : > { %p1930_p11 = scmp.ne.s32.totalorder %s1418_s12, %s1929_s27 }
 0x48e   : > { %v995_v48 = vpop.f32.mrf.mxu0 }
 0x48f   : > { %p1931_p1 = pnand %p1930_p11, %p2179_p10 }
 0x490   : > { %v1727_v49 = vpop.f32.mrf.mxu0 }
 0x491   : > { %p1932_p2 = pneg %p1931_p1 }
 0x494   : > { %v1104_v50 = vpop.f32.mrf.mxu0 }
 0x495   : > { %1119 = vrot.lane.b32.xlu1 %v1104_v50, %s2046_s2 }
 0x496   : > { %v1738_v51 = vpop.f32.mrf.mxu0 }
 0x498   : > { %v1107_v52 = vpop.f32.mrf.mxu0 }
 0x49a   : > { %v1739_v53 = vpop.f32.mrf.mxu0 }
 0x49b   : > { %v1644_v53 = vld [vmem:[%s579_s25] ss:$0 sm:$0xff]  ;;  %s2047_s25 = smov [#allocation7]  }
 0x49c   : > { %s1933_s11 = sshll.u32 %s2047_s25, 4  ;;  %s1934_s11 = int_to_ptr.vmem [resolvable:$false] %s1933_s11 }
 0x49d   : > { %p1936_p4 = scmp.lt.s32.totalorder %s1418_s12, %s1934_s11 }
 0x4d8   : > { %v1112_v54 = vpop.permute.xlu1 %1111 }
 0x4d9   : > { %v1122_v56 = vsel %vm662_vm3, %v768_v36, %v1112_v54 }
 0x4fd   : > { %v1116_v55 = vpop.permute.xlu0 %1115 }
 0x4fe   : > { %v1124_v57 = vsel %vm1123_vm6, %v1122_v56, %v1116_v55  ;;  %v1645_v55 = vld [vmem:[%s582_s20] ss:$0 sm:$0xff]  ;;  %s1935_s20 = scalar_lea.vmem %s1934_s11, 256 }
 0x4ff   : > { %p1937_p5 = scmp.lt.s32.totalorder %s1935_s20, %s1929_s27 }
 0x501   : > { %p1938_p6 = por %p1937_p5, %p1936_p4 }
 0x503   : > { %p1939_p7 = pnand %p1938_p6, %p1932_p2 }
 0x507   : > { %v1120_v58 = vpop.permute.xlu1 %1119 }
 0x508   : > { %v1126_v59 = vsel %vm1125_vm7, %v1124_v57, %v1120_v58 }
 0x509   : > { %v1127_v60 = vpack.c.bf16 %v1126_v59, %v1126_v59 }
 0x50b   : > { %1745 = vmatmul.mubr.msk.bf16.vlgmr.msra.gmra.mxu1 %vm609_vm2, %v1127_v60 }
 0x50c   : > { %1764 = vmatprep.mubr.msk.bf16.mxu1 %vm2032_vm1, %v2031_v2  ;;  %1757 = vmatpush3.bf16.msra.mxu1 %v1869_v10 }
 0x50d   : > { %1758 = vmatprep.subr.bf16.mxu1 %v2031_v2 }
 0x5cb   : > { %v1181_v61 = vpop.f32.mrf.mxu1 }
 0x5cc   : > { %v1182_v62 = vadd.f32 %v1181_v61, %v2280_v4  ;;  %v1870_v4 = vld [vmem:[%s2257_s28 + $0x10] sm:$0xff]  }
 0x5cd   : > { %v1746_v63 = vpop.f32.mrf.mxu1  ;;  %1759 = vmatpush3.bf16.msra.mxu1 %v1870_v4 }
 0x5ce   : > { %v1189_v0 = vsel %vm609_vm2, %v1182_v62, 0.0  ;;  %v1192_v1 = vmul.f32 %v1182_v62, %v1182_v62  ;;  %1760 = vmatprep.subr.bf16.mxu1 %v2031_v2 }
 0x5cf   : > { %1190 = vadd.xlane.f32.xlu0 %v1189_v0  ;;  %v1184_v3 = vpop.f32.mrf.mxu1 }
 0x5d0   : > { %v1193_v5 = vsel %vm609_vm2, %v1192_v1, 0.0 }
 0x5d1   : > { %1194 = vadd.xlane.f32.xlu1 %v1193_v5  ;;  %v1747_v6 = vpop.f32.mrf.mxu1  ;;  %1761 = vmatpush3.bf16.msra.mxu1 %v1871_v25 }
 0x5d2   : > { %1762 = vmatprep.subr.bf16.mxu1 %v2031_v2  ;;  %v1638_v2 = vld [vmem:[%s576_s0] ss:$0 sm:$0xff] }
 0x5d5   : > { %1763 = vmatpush3.bf16.msra.mxu1 %v1872_v26 }
 0x658   : > { %v1191_v11 = vpop.xlane.xlu0 %1190 }
 0x659   : > { %v1196_v12 = vmul.f32 0.03125, %v1191_v11 }
 0x65a   : > { %v1195_v13 = vpop.xlane.xlu1 %1194 }
 0x65b   : > { %v1198_v14 = vmul.f32 %v1196_v12, %v1196_v12  ;;  %v1197_v15 = vmul.f32 0.03125, %v1195_v13  ;;  %v1200_v18 = vsub.f32 %v1182_v62, %v1196_v12 }
 0x65d   : > { %v1199_v16 = vsub.f32 %v1197_v15, %v1198_v14 }
 0x65f   : > { %v1201_v17 = vadd.f32 1e-05, %v1199_v16 }
 0x661   : > { %1889 = vrsqrt.f32 %v1201_v17 }
 0x66e   : > { %v1890_v19 = vpop.eup %1889 }
 0x66f   : > { %v1203_v21 = vmul.f32 %v1890_v19, %v1200_v18 }
 0x671   : > { %v1210_v23 = vmul.f32 %v1632_v20, %v1203_v21 }
 0x673   : > { %v1217_v7 = vadd.f32 %v1633_v22, %v1210_v23 }
 0x675   : > { %v1218_v24 = vpack.c.bf16 %v1217_v7, %v1217_v7 }
 0x677   : > { %1753 = vmatmul.mubr.msk.bf16.vlgmr.msra.gmra.mxu0 %vm609_vm2, %v1218_v24 }
 0x737   : > { %v1279_v28 = vpop.f32.mrf.mxu0 }
 0x738   : > { %v1280_v29 = vadd.f32 %v1634_v27, %v1279_v28 }
 0x739   : > { %v1754_v30 = vpop.f32.mrf.mxu0 }
 0x73a   : > { %v1285_v31 = vmax.f32 %v1280_v29, 0.0 }
 0x73b   : > { %v1282_v32 = vpop.f32.mrf.mxu0 }
 0x73c   : > { %v1286_v33 = vpack.c.bf16 %v1285_v31, %v1285_v31 }
 0x73d   : > { %v1755_v34 = vpop.f32.mrf.mxu0 }
 0x73e   : > { %1765 = vmatmul.mubr.msk.bf16.vlgmr.msra.gmra.mxu1 %vm1326_vm8, %v1286_v33 }
 0x7fe   : > { %v1364_v35 = vpop.f32.mrf.mxu1 }
 0x7ff   : > { %v1365_v36 = vadd.f32 %v1638_v2, %v1364_v35 }
 0x800   : > { %v1766_v37 = vpop.f32.mrf.mxu1 }
 0x801   : > { %v1370_v38 = vadd.f32 %v1365_v36, %v1217_v7 }
 0x802   : > { %v1367_v39 = vpop.f32.mrf.mxu1 }
 0x803   : > { %v1373_v40 = vsel %vm609_vm2, %v1370_v38, 0.0  ;;  %v1376_v41 = vmul.f32 %v1370_v38, %v1370_v38 }
 0x804   : > { %1374 = vadd.xlane.f32.xlu0 %v1373_v40  ;;  %v1767_v42 = vpop.f32.mrf.mxu1 }
 0x805   : > { %v1377_v43 = vsel %vm609_vm2, %v1376_v41, 0.0 }
 0x808   : > { %1378 = vadd.xlane.f32.xlu0 %v1377_v43 }
 0x88d   : > { %v1375_v44 = vpop.xlane.xlu0 %1374 }
 0x88e   : > { %v1380_v45 = vmul.f32 0.03125, %v1375_v44 }
 0x890   : > { %v1382_v47 = vmul.f32 %v1380_v45, %v1380_v45  ;;  %v1384_v51 = vsub.f32 %v1370_v38, %v1380_v45 }
 0x891   : > { %v1379_v46 = vpop.xlane.xlu0 %1378 }
 0x892   : > { %v1381_v48 = vmul.f32 0.03125, %v1379_v46 }
 0x894   : > { %v1383_v49 = vsub.f32 %v1381_v48, %v1382_v47 }
 0x896   : > { %v1385_v50 = vadd.f32 1e-05, %v1383_v49 }
 0x898   : > { %1891 = vrsqrt.f32 %v1385_v50 }
 0x8a5   : > { %v1892_v52 = vpop.eup %1891 }
 0x8a6   : > { %v1387_v54 = vmul.f32 %v1892_v52, %v1384_v51 }
 0x8a8   : > { %v1394_v56 = vmul.f32 %v1644_v53, %v1387_v54 }
 0x8aa   : > { %v1401_v57 = vadd.f32 %v1645_v55, %v1394_v56 }
 0x8ac   : > { %1402 = vst.msk [vmem:[%s2271_s16] sm:$0xff] %vm609_vm2, %v1401_v57 }
 0x8ad   : > { %1942 = shalt.err (!%p1939_p7)
}
 0x8ae   : > { %s1943_s29 = scalar_lea.hbm %s1415_s6, 128  ;;  %s1947_s18 = scalar_lea.hbm %s2530_s3, 256 }
 0x8af   : > { %p1944_p8 = scmp.ne.s32.totalorder %s1415_s6, %s1943_s29  ;;  %p1948_p13 = scmp.lt.s32.totalorder %s1415_s6, %s2530_s3 }
 0x8b0   : > { %p1949_p0 = scmp.lt.s32.totalorder %s1947_s18, %s1943_s29 }
 0x8b1   : > { %p1945_p12 = pnand %p1944_p8, %p2179_p10 }
 0x8b2   : > { %p1950_p9 = por %p1949_p0, %p1948_p13 }
 0x8b3   : > { %p1946_p3 = pneg %p1945_p12 }
 0x8b5   : > { %p1951_p11 = pnand %p1950_p9, %p1946_p3 }
 0x8b7   : > { %1954 = shalt.err (!%p1951_p11)
}
 0x8b8   : > { %1770 = dma.vmem_to_hbm [thread:$0]  (%p2179_p10), %s1418_s12, 128, %s1415_s6, %s1404_s26  }
 0x8b9 PF: > { %s2531_s19 = sld [smem:[#allocation17_spill]] }
 0x8ba   : > { %s2532_s28 = sld [smem:[#allocation11_spill]] }
 0x8bb   : > { %s2533_s0 = sld [smem:[#allocation21_spill]] }
 0x8bf   : > { %p1781_p1 = scmp.ge.s32.totalorder %s2531_s19, 2 }
 0x8c0   : > { %s1429_s24 = sand.u32 1, %s2532_s28  }
 0x8c1   : > { %p2534_p2 = scmp.ne.s32.totalorder %s2533_s0, 0  ;;  %s1430_s23 = scalar_lea.sflag [#allocation6], %s1429_s24 }
 0x8c3   : > { %p1777_p4 = pnand %p1781_p1, %p2534_p2 }
 0x8c5   : > { %p1778_p5 = pneg %p1777_p4 }
 0x8c7   : > { %1994 = dma.done.wait (%p1778_p5), %s1430_s23, 128  }
 0x8c8   : > { %1996 = vsyncadd (%p1778_p5), %s1430_s23, 4294967168  ;;  %s32_s30 = sadd.s32 1, %s2531_s19   ;;  %s2535_s24 = sld [smem:[#allocation12_spill]] }
 0x8c9   : > { %p29_p6 = scmp.ge.s32.totalorder %s32_s30, 6   ;;  %s2536_s25 = sld [smem:[#allocation13_spill]] }
 0x8ca   : > { %s2537_s26 = sld [smem:[#allocation22_spill]] }
 0x8cb   : > { %s2538_s27 = sld [smem:[#allocation15_spill]]  ;;  %31 = sbr.rel (!%p29_p6) target bundleno = 18 (0x12), region = 143 }
 0x8cc   : > { %s2539_s28 = sld [smem:[#allocation16_spill]] }
 0x8cd   : > { %s2540_s29 = sld [smem:[#allocation18_spill]] }
 0x8ce   : > { %s2541_s0 = sld [smem:[#allocation19_spill]] }
 0x8d0   :  { %1435 = vsyncpa [#allocation5], 1 }
 0x8d1   :  { %1437 = vsyncpa [#allocation5 + $0x1], 1 }
 0x8d2   :  { %1438 = vsyncpa [#allocation6], 1 }
 0x8d3   :  { %1440 = vsyncpa [#allocation6 + $0x1], 1 }

</bundles_post_ra>
